<compile_context>
chip_gen: v6e
topology: v6e:2x2x1
jax: 0.10.0
libtpu: 0.0.40
codegen_flags: <defaults>
</compile_context>

<pallas_src>
import jax
import jax.numpy as jnp
from jax.experimental import pallas as pl
from jax.experimental.pallas import tpu as pltpu


# Batch tile: big enough to amortize ~0.35 us per-grid-step overhead (~85% of
# HBM roofline at 512+ rows), small enough that x/out blocks (128 KiB each,
# double-buffered ~0.5 MiB total) fit comfortably under every generation's
# scoped-VMEM default.
_DEFAULT_BLOCK_B = 1024
# Below this batch size pallas_call launch + DMA setup overhead dominates;
# plain XLA fusion of two tiny GEMMs is faster.
_PALLAS_MIN_BATCH = 512


def _fused_mlp_kernel(x_ref, w1t_ref, b1_ref, w2t_ref, b2_ref, o_ref):
    # h = relu(x @ W1.T + b1): MXU matmul with f32 accumulation; bias + ReLU on
    # the VPU in f32 (safe on v5e, which has no bf16 VPU path).
    h = jnp.dot(x_ref[...], w1t_ref[...], preferred_element_type=jnp.float32)
    h = jnp.maximum(h + b1_ref[...], 0.0)
    # y = h @ W2.T + b2: feed the MXU in the weight dtype, accumulate in f32.
    y = jnp.dot(h.astype(w2t_ref.dtype), w2t_ref[...],
                preferred_element_type=jnp.float32)
    o_ref[...] = (y + b2_ref[...]).astype(o_ref.dtype)


def _pallas_mlp(x, w1t, b1_2d, w2t, b2_2d, *, block_b=_DEFAULT_BLOCK_B):
    """Fused 2-layer MLP via a batch-tiled Pallas kernel. Returns f32 (B, D_out)."""
    B, D_in = x.shape
    H = w1t.shape[1]
    D_out = w2t.shape[1]

    # Batch tiling. For B <= block_b a single full-extent block is always
    # legal (block == full array extent). Otherwise pad B up to a multiple of
    # the tile so every grid step sees a full, (8,128)-friendly block.
    if B <= block_b:
        tb = B
        x_in = x
    else:
        tb = block_b
        pad = (-B) % tb
        x_in = jnp.pad(x, ((0, pad), (0, 0))) if pad else x
    bp = x_in.shape[0]
    grid = (bp // tb,)

    out = pl.pallas_call(
        _fused_mlp_kernel,
        out_shape=jax.ShapeDtypeStruct((bp, D_out), jnp.float32),
        grid=grid,
        in_specs=[
            pl.BlockSpec((tb, D_in), lambda i: (i, 0)),   # x: streamed over batch
            pl.BlockSpec((D_in, H), lambda i: (0, 0)),    # weights: VMEM-resident
            pl.BlockSpec((1, H), lambda i: (0, 0)),
            pl.BlockSpec((H, D_out), lambda i: (0, 0)),
            pl.BlockSpec((1, D_out), lambda i: (0, 0)),
        ],
        out_specs=pl.BlockSpec((tb, D_out), lambda i: (i, 0)),
        compiler_params=pltpu.CompilerParams(
            # Batch axis is embarrassingly parallel: shards across v7x's two
            # TensorCores; no-op on single-core v5e/v6e.
            dimension_semantics=("parallel",),
        ),
    )(x_in, w1t, b1_2d, w2t, b2_2d)

    return out[:B] if bp != B else out


def functional_module_forward(params, x, *, block_b=_DEFAULT_BLOCK_B,
                              use_bf16=False, force_pallas=False):
    """Equivalent of FunctionalModule.forward(params, x).

    params: (W1[H,D_in], b1[H], W2[D_out,H], b2[D_out]) -- named_parameters order
    x:      (batch, D_in)
    returns (batch, D_out) in x.dtype
    """
    w1, b1, w2, b2 = params

    # Glue: PyTorch Linear weights are (out, in); pre-transpose to (in, out) so
    # the kernel computes x @ W_t == x @ W.T. Biases made 2D (lane axis last),
    # kept in f32 since the accumulator is f32.
    w1t = jnp.transpose(w1)
    w2t = jnp.transpose(w2)
    b1_2d = b1.reshape(1, -1).astype(jnp.float32)
    b2_2d = b2.reshape(1, -1).astype(jnp.float32)

    B = x.shape[0]
    if B < _PALLAS_MIN_BATCH and not force_pallas:
        # Tiny batch: launch/DMA overhead would dominate; let XLA fuse it.
        h = jnp.maximum(x @ w1t + b1_2d, 0.0)
        return (h @ w2t + b2_2d).astype(x.dtype)

    if use_bf16:
        # Memory-bound regime on v6e/v7x: halving x / W bytes directly cuts
        # HBM traffic. Accumulation stays f32 inside the kernel.
        x_in = x.astype(jnp.bfloat16)
        w1t = w1t.astype(jnp.bfloat16)
        w2t = w2t.astype(jnp.bfloat16)
    else:
        x_in = x

    out = _pallas_mlp(x_in, w1t, b1_2d, w2t, b2_2d, block_b=block_b)
    return out.astype(x.dtype)


def _reference_forward(params, x):
    w1, b1, w2, b2 = params
    h = jnp.maximum(x @ w1.T + b1, 0.0)
    return h @ w2.T + b2


if __name__ == "__main__":
    key = jax.random.PRNGKey(0)
    k_x, k_w1, k_b1, k_w2, k_b2, k_x2 = jax.random.split(key, 6)

    B, D_in, H, D_out = 8, 32, 64, 32

    # Deterministic synthetic parameters (shapes from nn.Linear(32,64), nn.Linear(64,32)).
    w1 = jax.random.normal(k_w1, (H, D_in), jnp.float32) * 0.1
    b1 = jax.random.normal(k_b1, (H,), jnp.float32) * 0.1
    w2 = jax.random.normal(k_w2, (D_out, H), jnp.float32) * 0.1
    b2 = jax.random.normal(k_b2, (D_out,), jnp.float32) * 0.1
    params = (w1, b1, w2, b2)

    # --- small-shape demo (forces the Pallas path so the kernel runs) ---
    x = jax.random.normal(k_x, (B, D_in), jnp.float32)
    y = functional_module_forward(params, x, force_pallas=True)
    y = jax.block_until_ready(y)
    y_ref = _reference_forward(params, x)
    assert y.shape == (B, D_out)
    assert jnp.allclose(y, y_ref, atol=1e-5, rtol=1e-5), "mismatch vs reference (small batch)"

    # --- larger batch: exercises batch tiling, padding of the ragged tail,
    # and the "parallel" grid axis ---
    B2 = 2064  # not a multiple of the 1024-row tile -> padded internally
    x2 = jax.random.normal(k_x2, (B2, D_in), jnp.float32)
    y2 = functional_module_forward(params, x2)
    y2 = jax.block_until_ready(y2)
    y2_ref = _reference_forward(params, x2)
    assert y2.shape == (B2, D_out)
    assert jnp.allclose(y2, y2_ref, atol=1e-5, rtol=1e-5), "mismatch vs reference (tiled batch)"

    print("KERNEL_OK")
</pallas_src>

<mosaic_0001>
module attributes {stable_mosaic.version = 11 : i64} {
  func.func @_fused_mlp_kernel(%arg0: i32, %arg1: memref<8x32xf32, #tpu.memory_space<vmem>>, %arg2: memref<32x64xf32, #tpu.memory_space<vmem>>, %arg3: memref<1x64xf32, #tpu.memory_space<vmem>>, %arg4: memref<64x32xf32, #tpu.memory_space<vmem>>, %arg5: memref<1x32xf32, #tpu.memory_space<vmem>>, %arg6: memref<8x32xf32, #tpu.memory_space<vmem>>) attributes {dimension_semantics = [#tpu.dimension_semantics<parallel>], iteration_bounds = array<i64: 1>, scalar_prefetch = 0 : i64, scratch_operands = 0 : i64, tpu.core_type = #tpu.core_type<tc>, window_params = [{transform_indices = @transform_0, window_bounds = array<i64: 8, 32>}, {pipeline_mode = #tpu.pipeline_mode<synchronous>, transform_indices = @transform_1, window_bounds = array<i64: 32, 64>}, {pipeline_mode = #tpu.pipeline_mode<synchronous>, transform_indices = @transform_2, window_bounds = array<i64: 1, 64>}, {pipeline_mode = #tpu.pipeline_mode<synchronous>, transform_indices = @transform_3, window_bounds = array<i64: 64, 32>}, {pipeline_mode = #tpu.pipeline_mode<synchronous>, transform_indices = @transform_4, window_bounds = array<i64: 1, 32>}, {transform_indices = @transform_5, window_bounds = array<i64: 8, 32>}]} {
    %c0 = arith.constant 0 : index
    %c0_0 = arith.constant 0 : index
    %0 = vector.load %arg1[%c0, %c0_0] : memref<8x32xf32, #tpu.memory_space<vmem>>, vector<8x32xf32>
    %c0_1 = arith.constant 0 : index
    %c0_2 = arith.constant 0 : index
    %1 = vector.load %arg2[%c0_1, %c0_2] : memref<32x64xf32, #tpu.memory_space<vmem>>, vector<32x64xf32>
    %cst = arith.constant dense<0.000000e+00> : vector<8x64xf32>
    %2 = tpu.matmul %0, %1, %cst {dimension_numbers = #tpu.dot_dimension_numbers<[1], [0], [0], [1], [0, 0, 1, 1], [], []>} : vector<8x32xf32>, vector<32x64xf32>, vector<8x64xf32> -> vector<8x64xf32>
    %c0_3 = arith.constant 0 : index
    %c0_4 = arith.constant 0 : index
    %3 = vector.load %arg3[%c0_3, %c0_4] : memref<1x64xf32, #tpu.memory_space<vmem>>, vector<1x64xf32>
    %4 = vector.broadcast %3 : vector<1x64xf32> to vector<8x64xf32>
    %5 = arith.addf %2, %4 : vector<8x64xf32>
    %cst_5 = arith.constant 0.000000e+00 : f32
    %6 = vector.broadcast %cst_5 : f32 to vector<8x64xf32>
    %7 = arith.maximumf %5, %6 : vector<8x64xf32>
    %c0_6 = arith.constant 0 : index
    %c0_7 = arith.constant 0 : index
    %8 = vector.load %arg4[%c0_6, %c0_7] : memref<64x32xf32, #tpu.memory_space<vmem>>, vector<64x32xf32>
    %cst_8 = arith.constant dense<0.000000e+00> : vector<8x32xf32>
    %9 = tpu.matmul %7, %8, %cst_8 {dimension_numbers = #tpu.dot_dimension_numbers<[1], [0], [0], [1], [0, 0, 1, 1], [], []>} : vector<8x64xf32>, vector<64x32xf32>, vector<8x32xf32> -> vector<8x32xf32>
    %c0_9 = arith.constant 0 : index
    %c0_10 = arith.constant 0 : index
    %10 = vector.load %arg5[%c0_9, %c0_10] : memref<1x32xf32, #tpu.memory_space<vmem>>, vector<1x32xf32>
    %11 = vector.broadcast %10 : vector<1x32xf32> to vector<8x32xf32>
    %12 = arith.addf %9, %11 : vector<8x32xf32>
    %c0_11 = arith.constant 0 : index
    %c0_12 = arith.constant 0 : index
    %13 = vector.load %arg6[%c0_11, %c0_12] : memref<8x32xf32, #tpu.memory_space<vmem>>, vector<8x32xf32>
    tpu.vector_store %arg6[%c0_11, %c0_12], %12 {strides = array<i32>} : memref<8x32xf32, #tpu.memory_space<vmem>>, vector<8x32xf32>,
    return
  }
  func.func @transform_0(%arg0: i32) -> (i32, i32) {
    %c0_i32 = arith.constant 0 : i32
    %c0_i32_0 = arith.constant 0 : i32
    return %arg0, %c0_i32 : i32, i32
  }
  func.func @transform_1(%arg0: i32) -> (i32, i32) {
    %c0_i32 = arith.constant 0 : i32
    %c0_i32_0 = arith.constant 0 : i32
    %c0_i32_1 = arith.constant 0 : i32
    return %c0_i32, %c0_i32_0 : i32, i32
  }
  func.func @transform_2(%arg0: i32) -> (i32, i32) {
    %c0_i32 = arith.constant 0 : i32
    %c0_i32_0 = arith.constant 0 : i32
    %c0_i32_1 = arith.constant 0 : i32
    return %c0_i32, %c0_i32_0 : i32, i32
  }
  func.func @transform_3(%arg0: i32) -> (i32, i32) {
    %c0_i32 = arith.constant 0 : i32
    %c0_i32_0 = arith.constant 0 : i32
    %c0_i32_1 = arith.constant 0 : i32
    return %c0_i32, %c0_i32_0 : i32, i32
  }
  func.func @transform_4(%arg0: i32) -> (i32, i32) {
    %c0_i32 = arith.constant 0 : i32
    %c0_i32_0 = arith.constant 0 : i32
    %c0_i32_1 = arith.constant 0 : i32
    return %c0_i32, %c0_i32_0 : i32, i32
  }
  func.func @transform_5(%arg0: i32) -> (i32, i32) {
    %c0_i32 = arith.constant 0 : i32
    %c0_i32_0 = arith.constant 0 : i32
    return %arg0, %c0_i32 : i32, i32
  }
}

</mosaic_0001>

<bundles_post_ra>
// kernel: tpu_custom_call.1
= control target key start
LH: loop header
LB: loop body
LE: loop exit
PB: predicated region body
PF: predicated region fallthrough
CT: control target
= control target key end

     0   :  { %v285_v1 = vmov 0.0   ;;  %vm286_vm0 = vmmov 0   ;;  %s370_s0 = inlined_call_operand.vmem [shape: f32[8,32], index: 0, kind: input, shape index: {}]   ;;  %s371_s1 = inlined_call_operand.vmem [shape: f32[32,64], index: 1, kind: input, shape index: {}]   ;;  %s372_s2 = inlined_call_operand.vmem [shape: f32[1,64], index: 2, kind: input, shape index: {}]   ;;  %s373_s3 = inlined_call_operand.vmem [shape: f32[64,32], index: 3, kind: input, shape index: {}]   ;;  %s374_s4 = inlined_call_operand.vmem [shape: f32[1,32], index: 4, kind: input, shape index: {}]   ;;  %s375_s5 = inlined_call_operand.hbm [shape: f32[8,32], index: 5, kind: output, shape index: {}]  }
   0x1   :  { %v25_v0 = vld [vmem:[%s371_s1 + $0x18] sm:$0xff]  ;;  %230 = vmatprep.subr.mxu0 %v285_v1  ;;  %v24_v2 = vld [vmem:[%s371_s1 + $0x10] sm:$0xff]  ;;  %238 = vmatprep.mubr.msk.f32.mxu0 %vm286_vm0, %v285_v1  ;;  %v23_v5 = vld [vmem:[%s371_s1 + $0x8] sm:$0xff] }
   0x2   :  { %v115_v3 = vld [vmem:[%s373_s3 + $0x38] sm:$0xff]  ;;  %231 = vmatpush3.msra.mxu0 %v25_v0  ;;  %241 = vmatprep.subr.mxu1 %v285_v1  ;;  %v114_v4 = vld [vmem:[%s373_s3 + $0x30] sm:$0xff] }
   0x3   :  { %232 = vmatprep.subr.mxu0 %v285_v1  ;;  %242 = vmatpush3.msra.mxu1 %v115_v3 }
   0x4   :  { %10 = vsyncpa [#allocation3], 0  ;;  %233 = vmatpush3.msra.mxu0 %v24_v2  ;;  %243 = vmatprep.subr.mxu1 %v285_v1  ;;  %v113_v6 = vld [vmem:[%s373_s3 + $0x28] sm:$0xff]  ;;  %v22_v7 = vld [vmem:[%s371_s1] sm:$0xff]  ;;  %vm33_vm1 = vcmask 261120   ;;  %vm123_vm2 = vcmask 523264  }
   0x5   :  { %234 = vmatprep.subr.mxu0 %v285_v1  ;;  %244 = vmatpush3.msra.mxu1 %v114_v4  ;;  %v21_v8 = vld [vmem:[%s370_s0] sm:$0xff]  ;;  %v111_v10 = vld [vmem:[%s373_s3 + $0x18] sm:$0xff]  ;;  %v110_v11 = vld [vmem:[%s373_s3 + $0x10] sm:$0xff]  ;;  %s287_s21 = smov [#allocation2]  }
   0x6   :  { %235 = vmatpush3.msra.mxu0 %v23_v5  ;;  %245 = vmatprep.subr.mxu1 %v285_v1  ;;  %v112_v9 = vld [vmem:[%s373_s3 + $0x20] sm:$0xff]  ;;  %v109_v12 = vld [vmem:[%s373_s3 + $0x8] sm:$0xff]  ;;  %s204_s22 = sshll.u32 %s287_s21, 4  ;;  %s205_s22 = int_to_ptr.vmem [resolvable:$true] %s204_s22 }
   0x7   :  { %236 = vmatprep.subr.mxu0 %v285_v1  ;;  %246 = vmatpush3.msra.mxu1 %v113_v6  ;;  %v108_v13 = vld [vmem:[%s373_s3] sm:$0xff]  ;;  %s263_s3 = scalar_lea.vmem %s205_s22, 128  ;;  %p268_p1 = scmp.lt.s32.totalorder %s205_s22, %s205_s22 }
   0x8   :  { %237 = vmatpush3.msra.mxu0 %v22_v7  ;;  %247 = vmatprep.subr.mxu1 %v285_v1  ;;  %v212_v14 = vld [vmem:[%s372_s2] ss:$0 sm:$0xff]  ;;  %p264_p0 = scmp.ne.s32.totalorder %s205_s22, %s263_s3  ;;  %p269_p2 = scmp.lt.s32.totalorder %s263_s3, %s263_s3 }
   0x9   :  { %239 = vmatmul.mubr.msk.f32.vlgmr.msra.gmra.mxu0 %vm33_vm1, %v21_v8  ;;  %248 = vmatpush3.msra.mxu1 %v112_v9  ;;  %v214_v19 = vld [vmem:[%s374_s4] ss:$0 sm:$0xff] }
   0xa   :  { %249 = vmatprep.subr.mxu1 %v285_v1  ;;  %257 = vmatprep.mubr.msk.f32.mxu1 %vm286_vm0, %v285_v1  ;;  %p270_p3 = por %p269_p2, %p268_p1 }
   0xb   :  { %250 = vmatpush3.msra.mxu1 %v111_v10 }
   0xc   :  { %251 = vmatprep.subr.mxu1 %v285_v1  ;;  %p271_p4 = pnand %p270_p3, %p264_p0 }
   0xd   :  { %252 = vmatpush3.msra.mxu1 %v110_v11 }
   0xe   :  { %253 = vmatprep.subr.mxu1 %v285_v1 }
   0xf   :  { %254 = vmatpush3.msra.mxu1 %v109_v12 }
  0x10   :  { %255 = vmatprep.subr.mxu1 %v285_v1 }
  0x11   :  { %256 = vmatpush3.msra.mxu1 %v108_v13 }
  0xc9   :  { %v103_v15 = vpop.f32.mrf.mxu0 }
  0xca   :  { %v104_v16 = vadd.f32 %v212_v14, %v103_v15 }
  0xcb   :  { %v240_v17 = vpop.f32.mrf.mxu0 }
  0xcc   :  { %v107_v18 = vmax.f32 %v104_v16, 0.0 }
  0xce   :  { %258 = vmatmul.mubr.msk.f32.vlgmr.msra.gmra.mxu1 %vm123_vm2, %v107_v18 }
 0x18e   :  { %v193_v20 = vpop.f32.mrf.mxu1 }
 0x18f   :  { %v194_v21 = vadd.f32 %v214_v19, %v193_v20 }
 0x190   :  { %v259_v22 = vpop.f32.mrf.mxu1 }
 0x191   :  { %197 = vst.msk [vmem:[#allocation2] sm:$0xff] %vm33_vm1, %v194_v21 }
 0x192   :  { %274 = shalt.err (!%p271_p4)
}
 0x193   :  { %207 = dma.vmem_to_hbm [thread:$0]  %s205_s22, 128, %s375_s5, [#allocation3]  }
 0x194   :  { %283 = dma.done.wait [#allocation3], 128  }
 0x195   :  { %284 = vsyncadd [#allocation3], 4294967168 }
 0x196   :  { %211 = vsyncpa [#allocation3], 1 }

</bundles_post_ra>
